<compile_context>
chip_gen: v5e
topology: v5e:2x2
jax: 0.10.0
libtpu: 0.0.40
codegen_flags: <defaults>
</compile_context>

<pallas_src>
import jax
import jax.numpy as jnp
from jax.experimental import pallas as pl
from jax.experimental.pallas import tpu as pltpu

N_EMBED = 384
BLOCK_SIZE = 256  # max causal-mask size in the PyTorch module (tril buffer)


def head_kernel(x_ref, wqkv_ref, bias_ref, o_ref):
    # x_ref:    (BB, T, C)   compute dtype (f32 or bf16)
    # wqkv_ref: (C, 3H)      compute dtype
    # bias_ref: (T, T)       f32 additive causal bias (0 / -inf)
    # o_ref:    (BB, T, H)
    BB, T, C = x_ref.shape
    H = o_ref.shape[-1]
    cdt = x_ref.dtype  # MXU operand dtype

    # NOTE: PyTorch module scales by C**-0.5 (embedding dim, not head_size).
    scale = jnp.float32(C) ** jnp.float32(-0.5)

    # Fused Q/K/V projection: one matmul over all BB*T rows (f32 accumulate).
    x2d = x_ref[...].reshape(BB * T, C)
    qkv = jnp.dot(x2d, wqkv_ref[...], preferred_element_type=jnp.float32)
    qkv = qkv.reshape(BB, T, 3 * H)
    q = qkv[:, :, 0 * H:1 * H].astype(cdt)
    k = qkv[:, :, 1 * H:2 * H].astype(cdt)
    v = qkv[:, :, 2 * H:3 * H].astype(cdt)

    # Scaled scores; contract on the last axis of both operands (no k.T).
    s = jnp.einsum('bqh,bkh->bqk', q, k, preferred_element_type=jnp.float32)
    wei = s * scale + bias_ref[...]          # broadcast (T,T) bias over batch

    # Numerically-stable softmax, all in f32 (VPU/EUP path).
    m = jnp.max(wei, axis=-1, keepdims=True)
    p = jnp.exp(wei - m)
    denom = jnp.sum(p, axis=-1, keepdims=True)
    p = p * pl.reciprocal(denom, approx=False)

    # TODO(synk): nn.Dropout(0.2) is identity in eval mode; training-time
    # dropout (pltpu.prng_random_bits Bernoulli mask) intentionally omitted.

    out = jnp.einsum('bqk,bkh->bqh', p.astype(cdt), v,
                     preferred_element_type=jnp.float32)
    o_ref[...] = out.astype(o_ref.dtype)


def _choose_block_b(B, T, C, itemsize, budget_bytes=2 << 20, cap=16):
    """Largest divisor of B with x tile <= budget (and <= cap, v7x-friendly)."""
    per_batch = T * C * itemsize
    bb = max(1, min(B, cap, budget_bytes // max(per_batch, 1)))
    while B % bb:
        bb -= 1
    return bb


def head_forward(x, wq_t, wk_t, wv_t, *, compute_dtype=None, block_b=None):
    """x: (B, T, C); w*_t: (C, H) (transposed from PyTorch (H, C) layout)."""
    B, T, C = x.shape
    H = wq_t.shape[1]
    assert C == N_EMBED and T <= BLOCK_SIZE

    if compute_dtype is None:
        compute_dtype = x.dtype
    compute_dtype = jnp.dtype(compute_dtype)

    # Fuse the three projection weights into one (C, 3H) operand; cast x and
    # weights to the MXU compute dtype in the wrapper (halves HBM traffic for
    # bf16).
    wqkv = jnp.concatenate([wq_t, wk_t, wv_t], axis=1).astype(compute_dtype)
    xc = x.astype(compute_dtype)

    # Additive causal bias (0 on/below the diagonal, -inf above), computed
    # once here instead of per grid step inside the kernel.
    bias = jnp.where(jnp.tril(jnp.ones((T, T), dtype=bool)),
                     jnp.float32(0.0), jnp.float32(-jnp.inf))

    if block_b is None:
        block_b = _choose_block_b(B, T, C, compute_dtype.itemsize)
    assert B % block_b == 0

    return pl.pallas_call(
        head_kernel,
        out_shape=jax.ShapeDtypeStruct((B, T, H), x.dtype),
        grid_spec=pltpu.PrefetchScalarGridSpec(
            num_scalar_prefetch=0,
            grid=(B // block_b,),
            in_specs=[
                pl.BlockSpec((block_b, T, C), lambda b: (b, 0, 0)),
                pl.BlockSpec((C, 3 * H), lambda b: (0, 0)),   # resident
                pl.BlockSpec((T, T), lambda b: (0, 0)),        # resident
            ],
            out_specs=pl.BlockSpec((block_b, T, H), lambda b: (b, 0, 0)),
        ),
        compiler_params=pltpu.CompilerParams(
            dimension_semantics=("parallel",)),
    )(xc, wqkv, bias)


def reference_forward(x, wq_t, wk_t, wv_t):
    """Pure-JAX reference mirroring the PyTorch forward (eval mode)."""
    B, T, C = x.shape
    q = x @ wq_t
    k = x @ wk_t
    v = x @ wv_t
    wei = (q @ jnp.swapaxes(k, -2, -1)) * (C ** -0.5)
    mask = jnp.tril(jnp.ones((T, T), dtype=bool))
    wei = jnp.where(mask[None, :, :], wei, -jnp.inf)
    wei = jax.nn.softmax(wei, axis=-1)
    return wei @ v


if __name__ == "__main__":
    key = jax.random.PRNGKey(0)
    B, T, C = 2, 8, N_EMBED      # small seq; n_embed fixed by the module
    head_size = 32

    kx, kq, kk, kv = jax.random.split(key, 4)
    x = jax.random.normal(kx, (B, T, C), dtype=jnp.float32)
    # nn.Linear(n_embed, head_size, bias=False) weight is (head_size, n_embed);
    # deterministic init, then transpose to (n_embed, head_size) for the kernel.
    init_scale = 1.0 / jnp.sqrt(jnp.float32(N_EMBED))
    wq = jax.random.uniform(kq, (head_size, C), jnp.float32, -init_scale, init_scale)
    wk = jax.random.uniform(kk, (head_size, C), jnp.float32, -init_scale, init_scale)
    wv = jax.random.uniform(kv, (head_size, C), jnp.float32, -init_scale, init_scale)
    wq_t, wk_t, wv_t = wq.T, wk.T, wv.T

    ref = reference_forward(x, wq_t, wk_t, wv_t)

    # f32 path: bit-for-bit-tight against the pure-JAX reference.
    out = jax.block_until_ready(head_forward(x, wq_t, wk_t, wv_t))
    assert out.shape == (B, T, head_size)
    assert jnp.allclose(out, ref, atol=1e-4, rtol=1e-4)

    # bf16-MXU path (f32 accumulation, f32 softmax): looser tolerance.
    out_bf16 = jax.block_until_ready(
        head_forward(x, wq_t, wk_t, wv_t, compute_dtype=jnp.bfloat16))
    assert out_bf16.shape == (B, T, head_size)
    assert jnp.allclose(out_bf16.astype(jnp.float32), ref, atol=3e-2, rtol=3e-2)

    print("KERNEL_OK")
</pallas_src>

<mosaic_0001>
module attributes {stable_mosaic.version = 11 : i64} {
  func.func @head_kernel(%arg0: i32, %arg1: memref<2x8x384xf32, #tpu.memory_space<vmem>>, %arg2: memref<384x96xf32, #tpu.memory_space<vmem>>, %arg3: memref<8x8xf32, #tpu.memory_space<vmem>>, %arg4: memref<2x8x32xf32, #tpu.memory_space<vmem>>) attributes {dimension_semantics = [#tpu.dimension_semantics<parallel>], iteration_bounds = array<i64: 1>, scalar_prefetch = 0 : i64, scratch_operands = 0 : i64, tpu.core_type = #tpu.core_type<tc>, window_params = [{transform_indices = @transform_0, window_bounds = array<i64: 2, 8, 384>}, {pipeline_mode = #tpu.pipeline_mode<synchronous>, transform_indices = @transform_1, window_bounds = array<i64: 384, 96>}, {pipeline_mode = #tpu.pipeline_mode<synchronous>, transform_indices = @transform_2, window_bounds = array<i64: 8, 8>}, {transform_indices = @transform_3, window_bounds = array<i64: 2, 8, 32>}]} {
    %cst = arith.constant 3.840000e+02 : f32
    %cst_0 = arith.constant -5.000000e-01 : f32
    %0 = math.powf %cst, %cst_0 : f32
    %c0 = arith.constant 0 : index
    %c0_1 = arith.constant 0 : index
    %c0_2 = arith.constant 0 : index
    %1 = vector.load %arg1[%c0, %c0_1, %c0_2] : memref<2x8x384xf32, #tpu.memory_space<vmem>>, vector<2x8x384xf32>
    %2 = vector.shape_cast %1 : vector<2x8x384xf32> to vector<16x384xf32>
    %c0_3 = arith.constant 0 : index
    %c0_4 = arith.constant 0 : index
    %3 = vector.load %arg2[%c0_3, %c0_4] : memref<384x96xf32, #tpu.memory_space<vmem>>, vector<384x96xf32>
    %cst_5 = arith.constant dense<0.000000e+00> : vector<16x96xf32>
    %4 = tpu.matmul %2, %3, %cst_5 {dimension_numbers = #tpu.dot_dimension_numbers<[1], [0], [0], [1], [0, 0, 1, 1], [], []>} : vector<16x384xf32>, vector<384x96xf32>, vector<16x96xf32> -> vector<16x96xf32>
    %5 = vector.shape_cast %4 : vector<16x96xf32> to vector<2x8x96xf32>
    %6 = vector.extract_strided_slice %5 {offsets = [0, 0, 0], sizes = [2, 8, 32], strides = [1, 1, 1]} : vector<2x8x96xf32> to vector<2x8x32xf32>
    %7 = vector.extract_strided_slice %5 {offsets = [0, 0, 32], sizes = [2, 8, 32], strides = [1, 1, 1]} : vector<2x8x96xf32> to vector<2x8x32xf32>
    %8 = vector.extract_strided_slice %5 {offsets = [0, 0, 64], sizes = [2, 8, 32], strides = [1, 1, 1]} : vector<2x8x96xf32> to vector<2x8x32xf32>
    "tpu.trace_start"() <{level = 10 : i32, message = "bqh,bkh->bqk"}> : () -> ()
    %cst_6 = arith.constant dense<0.000000e+00> : vector<2x8x8xf32>
    %9 = tpu.matmul %6, %7, %cst_6 {dimension_numbers = #tpu.dot_dimension_numbers<[2], [2], [1], [1], [0, 0, 0, 1, 1, 1], [0], [0]>} : vector<2x8x32xf32>, vector<2x8x32xf32>, vector<2x8x8xf32> -> vector<2x8x8xf32>
    "tpu.trace_stop"() : () -> ()
    %10 = vector.broadcast %0 : f32 to vector<2x8x8xf32>
    %11 = arith.mulf %9, %10 : vector<2x8x8xf32>
    %c0_7 = arith.constant 0 : index
    %c0_8 = arith.constant 0 : index
    %12 = vector.load %arg3[%c0_7, %c0_8] : memref<8x8xf32, #tpu.memory_space<vmem>>, vector<8x8xf32>
    %13 = vector.shape_cast %12 : vector<8x8xf32> to vector<1x8x8xf32>
    %14 = vector.broadcast %13 : vector<1x8x8xf32> to vector<2x8x8xf32>
    %15 = arith.addf %11, %14 : vector<2x8x8xf32>
    %cst_9 = arith.constant dense<0xFF800000> : vector<2x8xf32>
    %16 = vector.multi_reduction <maximumf>, %15, %cst_9 [2] : vector<2x8x8xf32> to vector<2x8xf32>
    %17 = vector.shape_cast %16 : vector<2x8xf32> to vector<2x8x1xf32>
    %18 = vector.broadcast %17 : vector<2x8x1xf32> to vector<2x8x8xf32>
    %19 = arith.subf %15, %18 : vector<2x8x8xf32>
    %20 = math.exp %19 : vector<2x8x8xf32>
    %cst_10 = arith.constant dense<0.000000e+00> : vector<2x8xf32>
    %21 = vector.multi_reduction <add>, %20, %cst_10 [2] : vector<2x8x8xf32> to vector<2x8xf32>
    %22 = vector.shape_cast %21 : vector<2x8xf32> to vector<2x8x1xf32>
    %23 = tpu.reciprocal %22 : vector<2x8x1xf32> -> vector<2x8x1xf32>
    %24 = vector.broadcast %23 : vector<2x8x1xf32> to vector<2x8x8xf32>
    %25 = arith.mulf %20, %24 : vector<2x8x8xf32>
    "tpu.trace_start"() <{level = 10 : i32, message = "bqk,bkh->bqh"}> : () -> ()
    %cst_11 = arith.constant dense<0.000000e+00> : vector<2x8x32xf32>
    %26 = tpu.matmul %25, %8, %cst_11 {dimension_numbers = #tpu.dot_dimension_numbers<[2], [1], [1], [2], [0, 0, 0, 1, 1, 2], [0], [0]>} : vector<2x8x8xf32>, vector<2x8x32xf32>, vector<2x8x32xf32> -> vector<2x8x32xf32>
    "tpu.trace_stop"() : () -> ()
    %c0_12 = arith.constant 0 : index
    %c0_13 = arith.constant 0 : index
    %c0_14 = arith.constant 0 : index
    %27 = vector.load %arg4[%c0_12, %c0_13, %c0_14] : memref<2x8x32xf32, #tpu.memory_space<vmem>>, vector<2x8x32xf32>
    tpu.vector_store %arg4[%c0_12, %c0_13, %c0_14], %26 {strides = array<i32>} : memref<2x8x32xf32, #tpu.memory_space<vmem>>, vector<2x8x32xf32>,
    return
  }
  func.func @transform_0(%arg0: i32) -> (i32, i32, i32) {
    %c0_i32 = arith.constant 0 : i32
    %c0_i32_0 = arith.constant 0 : i32
    %c0_i32_1 = arith.constant 0 : i32
    return %arg0, %c0_i32, %c0_i32_0 : i32, i32, i32
  }
  func.func @transform_1(%arg0: i32) -> (i32, i32) {
    %c0_i32 = arith.constant 0 : i32
    %c0_i32_0 = arith.constant 0 : i32
    %c0_i32_1 = arith.constant 0 : i32
    return %c0_i32, %c0_i32_0 : i32, i32
  }
  func.func @transform_2(%arg0: i32) -> (i32, i32) {
    %c0_i32 = arith.constant 0 : i32
    %c0_i32_0 = arith.constant 0 : i32
    %c0_i32_1 = arith.constant 0 : i32
    return %c0_i32, %c0_i32_0 : i32, i32
  }
  func.func @transform_3(%arg0: i32) -> (i32, i32, i32) {
    %c0_i32 = arith.constant 0 : i32
    %c0_i32_0 = arith.constant 0 : i32
    %c0_i32_1 = arith.constant 0 : i32
    return %arg0, %c0_i32, %c0_i32_0 : i32, i32, i32
  }
}

</mosaic_0001>

<bundles_post_ra>
// kernel: tpu_custom_call.1
= control target key start
LH: loop header
LB: loop body
LE: loop exit
PB: predicated region body
PF: predicated region fallthrough
CT: control target
= control target key end

     0   :  { %s569_s0 = inlined_call_operand.vmem [shape: f32[2,8,384], index: 0, kind: input, shape index: {}]   ;;  %s570_s1 = inlined_call_operand.vmem [shape: f32[384,96], index: 1, kind: input, shape index: {}]   ;;  %s571_s2 = inlined_call_operand.vmem [shape: f32[8,8], index: 2, kind: input, shape index: {}]   ;;  %s572_s3 = inlined_call_operand.hbm [shape: f32[2,8,32], index: 3, kind: output, shape index: {}]  }
   0x1   :  { %v68_v0 = vld [vmem:[%s570_s1 + $0x178] sm:$0xff]  ;;  %v67_v1 = vld [vmem:[%s570_s1 + $0x170] sm:$0xff]  ;;  %v66_v5 = vld [vmem:[%s570_s1 + $0x168] sm:$0xff] }
   0x2   :  { %v36_v2 = vld [vmem:[%s570_s1 + $0x78] sm:$0xff]  ;;  %115 = vmatpush.msra.mxu2 %v68_v0  ;;  %v35_v4 = vld [vmem:[%s570_s1 + $0x70] sm:$0xff]  ;;  %v34_v7 = vld [vmem:[%s570_s1 + $0x68] sm:$0xff] }
   0x3   :  { %69 = vmatpush.msra.mxu0 %v36_v2  ;;  %v52_v3 = vld [vmem:[%s570_s1 + $0xf8] sm:$0xff]  ;;  %v51_v6 = vld [vmem:[%s570_s1 + $0xf0] sm:$0xff]  ;;  %v50_v8 = vld [vmem:[%s570_s1 + $0xe8] sm:$0xff] }
   0x4   :  { %92 = vmatpush.msra.mxu1 %v52_v3  ;;  %116 = vmatpush.msra.mxu2 %v67_v1  ;;  %v65_v9 = vld [vmem:[%s570_s1 + $0x160] sm:$0xff]  ;;  %v64_v12 = vld [vmem:[%s570_s1 + $0x158] sm:$0xff]  ;;  %v63_v15 = vld [vmem:[%s570_s1 + $0x150] sm:$0xff] }
   0x5   :  { %70 = vmatpush.msra.mxu0 %v35_v4  ;;  %v33_v10 = vld [vmem:[%s570_s1 + $0x60] sm:$0xff]  ;;  %v32_v13 = vld [vmem:[%s570_s1 + $0x58] sm:$0xff]  ;;  %v31_v16 = vld [vmem:[%s570_s1 + $0x50] sm:$0xff] }
   0x6   :  { %93 = vmatpush.msra.mxu1 %v51_v6  ;;  %117 = vmatpush.msra.mxu2 %v66_v5  ;;  %v49_v11 = vld [vmem:[%s570_s1 + $0xe0] sm:$0xff]  ;;  %v48_v14 = vld [vmem:[%s570_s1 + $0xd8] sm:$0xff]  ;;  %v47_v17 = vld [vmem:[%s570_s1 + $0xd0] sm:$0xff] }
   0x7   :  { %71 = vmatpush.msra.mxu0 %v34_v7  ;;  %v62_v18 = vld [vmem:[%s570_s1 + $0x148] sm:$0xff]  ;;  %v61_v21 = vld [vmem:[%s570_s1 + $0x140] sm:$0xff]  ;;  %v60_v24 = vld [vmem:[%s570_s1 + $0x138] sm:$0xff] }
   0x8   :  { %94 = vmatpush.msra.mxu1 %v50_v8  ;;  %118 = vmatpush.msra.mxu2 %v65_v9  ;;  %v30_v19 = vld [vmem:[%s570_s1 + $0x48] sm:$0xff]  ;;  %v29_v22 = vld [vmem:[%s570_s1 + $0x40] sm:$0xff]  ;;  %v28_v25 = vld [vmem:[%s570_s1 + $0x38] sm:$0xff] }
   0x9   :  { %72 = vmatpush.msra.mxu0 %v33_v10  ;;  %v46_v20 = vld [vmem:[%s570_s1 + $0xc8] sm:$0xff]  ;;  %v45_v23 = vld [vmem:[%s570_s1 + $0xc0] sm:$0xff]  ;;  %v44_v26 = vld [vmem:[%s570_s1 + $0xb8] sm:$0xff] }
   0xa   :  { %95 = vmatpush.msra.mxu1 %v49_v11  ;;  %119 = vmatpush.msra.mxu2 %v64_v12  ;;  %v59_v27 = vld [vmem:[%s570_s1 + $0x130] sm:$0xff]  ;;  %v58_v30 = vld [vmem:[%s570_s1 + $0x128] sm:$0xff] }
   0xb   :  { %73 = vmatpush.msra.mxu0 %v32_v13  ;;  %v27_v28 = vld [vmem:[%s570_s1 + $0x30] sm:$0xff]  ;;  %v26_v31 = vld [vmem:[%s570_s1 + $0x28] sm:$0xff] }
   0xc   :  { %96 = vmatpush.msra.mxu1 %v48_v14  ;;  %120 = vmatpush.msra.mxu2 %v63_v15  ;;  %v43_v29 = vld [vmem:[%s570_s1 + $0xb0] sm:$0xff] }
   0xd   :  { %74 = vmatpush.msra.mxu0 %v31_v16 }
   0xe   :  { %97 = vmatpush.msra.mxu1 %v47_v17  ;;  %121 = vmatpush.msra.mxu2 %v62_v18 }
   0xf   :  { %75 = vmatpush.msra.mxu0 %v30_v19 }
  0x10   :  { %98 = vmatpush.msra.mxu1 %v46_v20  ;;  %122 = vmatpush.msra.mxu2 %v61_v21 }
  0x11   :  { %76 = vmatpush.msra.mxu0 %v29_v22 }
  0x12   :  { %99 = vmatpush.msra.mxu1 %v45_v23  ;;  %123 = vmatpush.msra.mxu2 %v60_v24 }
  0x13   :  { %77 = vmatpush.msra.mxu0 %v28_v25 }
  0x14   :  { %100 = vmatpush.msra.mxu1 %v44_v26 }
  0x15   :  { %8 = vsyncpa [#allocation3], 0  ;;  %124 = vmatpush.msra.mxu2 %v59_v27  ;;  %78 = vmatpush.msra.mxu0 %v27_v28  ;;  %v42_v32 = vld [vmem:[%s570_s1 + $0xa8] sm:$0xff]  ;;  %v57_v33 = vld [vmem:[%s570_s1 + $0x120] sm:$0xff]  ;;  %s364_s11 = smov 96   ;;  %s365_s12 = smov 64  }
  0x16   :  { %101 = vmatpush.msra.mxu1 %v43_v29  ;;  %v25_v34 = vld [vmem:[%s570_s1 + $0x20] sm:$0xff]  ;;  %v56_v36 = vld [vmem:[%s570_s1 + $0x118] sm:$0xff]  ;;  %v55_v39 = vld [vmem:[%s570_s1 + $0x110] sm:$0xff]  ;;  %vm141_vm0 = vcmask 261120   ;;  %vm198_vm1 = vcmask 64512   ;;  %s307_s17 = sshll.u32 %s572_s3, 4  ;;  %s308_s17 = int_to_ptr.hbm [resolvable:$true] %s307_s17 }
  0x17   :  { %125 = vmatpush.msra.mxu2 %v58_v30  ;;  %79 = vmatpush.msra.mxu0 %v26_v31  ;;  %v41_v35 = vld [vmem:[%s570_s1 + $0xa0] sm:$0xff]  ;;  %v24_v37 = vld [vmem:[%s570_s1 + $0x18] sm:$0xff]  ;;  %v23_v40 = vld [vmem:[%s570_s1 + $0x10] sm:$0xff]  ;;  %s367_s18 = smov 128   ;;  %s368_s19 = smov 8  }
  0x18   :  { %102 = vmatpush.msra.mxu1 %v42_v32  ;;  %v40_v38 = vld [vmem:[%s570_s1 + $0x98] sm:$0xff]  ;;  %v39_v41 = vld [vmem:[%s570_s1 + $0x90] sm:$0xff]  ;;  %v54_v42 = vld [vmem:[%s570_s1 + $0x108] sm:$0xff] }
  0x19   :  { %126 = vmatpush.msra.mxu2 %v57_v33  ;;  %80 = vmatpush.msra.mxu0 %v25_v34  ;;  %v22_v43 = vld [vmem:[%s570_s1 + $0x8] sm:$0xff]  ;;  %v53_v45 = vld [vmem:[%s570_s1 + $0x100] sm:$0xff]  ;;  %v17_v47 = vld [vmem:[%s569_s0 + $0x10] sm:$0xff] }
  0x1a   :  { %103 = vmatpush.msra.mxu1 %v41_v35  ;;  %v38_v44 = vld [vmem:[%s570_s1 + $0x88] sm:$0xff]  ;;  %v21_v46 = vld [vmem:[%s570_s1] sm:$0xff]  ;;  %v18_v52 = vld [vmem:[%s569_s0 + $0x18] sm:$0xff] }
  0x1b   :  { %127 = vmatpush.msra.mxu2 %v56_v36  ;;  %81 = vmatpush.msra.mxu0 %v24_v37  ;;  %v37_v48 = vld [vmem:[%s570_s1 + $0x80] sm:$0xff]  ;;  %v16_v50 = vld [vmem:[%s569_s0 + $0x8] sm:$0xff] }
  0x1c   :  { %104 = vmatpush.msra.mxu1 %v40_v38  ;;  %v15_v49 = vld [vmem:[%s569_s0] sm:$0xff]  ;;  %v20_v51 = vld [vmem:[%s569_s0 + $0x28] sm:$0xff] }
  0x1d   :  { %128 = vmatpush.msra.mxu2 %v55_v39  ;;  %82 = vmatpush.msra.mxu0 %v23_v40  ;;  %v19_v53 = vld [vmem:[%s569_s0 + $0x20] sm:$0xff] }
  0x1e   :  { %105 = vmatpush.msra.mxu1 %v39_v41  ;;  %v195_v4 = vld [vmem:[%s571_s2] sm:$0xff]  ;;  %s366_s2 = smov [#allocation2]  }
  0x1f   :  { %129 = vmatpush.msra.mxu2 %v54_v42  ;;  %83 = vmatpush.msra.mxu0 %v22_v43  ;;  %s305_s14 = sshll.u32 %s366_s2, 4  ;;  %s306_s14 = int_to_ptr.vmem [resolvable:$true] %s305_s14 }
  0x20   :  { %106 = vmatpush.msra.mxu1 %v38_v44 }
  0x21   :  { %130 = vmatpush.msra.mxu2 %v53_v45  ;;  %84 = vmatpush.msra.mxu0 %v21_v46 }
  0x22   :  { %131 = vmatmul.f32.vlgmr.msra.gmra.mxu2 %v17_v47  ;;  %107 = vmatpush.msra.mxu1 %v37_v48 }
  0x23   :  { %85 = vmatmul.f32.vlgmr.msra.gmra.mxu0 %v15_v49  ;;  %108 = vmatmul.f32.vlgmr.msra.gmra.mxu1 %v16_v50 }
  0x2a   :  { %134 = vmatmul.f32.gmra.mxu2 %v20_v51 }
  0x2b   :  { %88 = vmatmul.f32.gmra.mxu0 %v18_v52  ;;  %111 = vmatmul.f32.gmra.mxu1 %v19_v53 }
  0xa0   :  { %v86_v54 = vpop.f32.mrf.mxu0  ;;  %v109_v55 = vpop.f32.mrf.mxu1 }
  0xa1   :  { %v110_v56 = vadd.f32 %v109_v55, %v86_v54 }
  0xa5   :  { %v132_v57 = vpop.f32.mrf.mxu2 }
  0xa6   :  { %v133_v58 = vadd.f32 %v132_v57, %v110_v56 }
  0xa8   :  { %139 = vrot.lane.b32.xlu0 %v133_v58, %s364_s11  ;;  %v89_v59 = vpop.f32.mrf.mxu0  ;;  %v112_v60 = vpop.f32.mrf.mxu1 }
  0xa9   :  { %v113_v61 = vadd.f32 %v112_v60, %v89_v59 }
  0xad   :  { %v135_v62 = vpop.f32.mrf.mxu2 }
  0xae   :  { %v136_v63 = vadd.f32 %v135_v62, %v113_v61 }
  0xb0   :  { %167 = vrot.lane.b32.xlu0 %v136_v63, %s364_s11 }
  0xb8   :  { %247 = vrot.lane.b32.xlu0 %v133_v58, %s365_s12 }
 0x11a   :  { %v140_v0 = vpop.permute.xlu0 %139 }
 0x11b   :  { %319 = vmatpush.xpose.msk.msra.mxu3 %vm141_vm0, %v140_v0 }
 0x11e   :  { %320 = vmatmul.msk.f32.vlgmr.msra.gmra.mxu3 %vm141_vm0, %v133_v58 }
 0x122   :  { %v168_v1 = vpop.permute.xlu0 %167 }
 0x123   :  { %321 = vmatpush.xpose.msk.msrb.mxu3 %vm141_vm0, %v168_v1 }
 0x126   :  { %322 = vmatmul.msk.f32.vlgmr.msrb.gmra.mxu3 %vm141_vm0, %v136_v63 }
 0x12a   :  { %v248_v2 = vpop.permute.xlu0 %247 }
 0x12b   :  { %268 = vmatpush.msra.mxu3 %v248_v2 }
 0x1a1   :  { %v163_v3 = vpop.f32.mrf.mxu3 }
 0x1a2   :  { %v193_v5 = vmul.f32 0.05103104, %v163_v3 }
 0x1a4   :  { %v196_v6 = vadd.f32 %v195_v4, %v193_v5 }
 0x1a6   :  { %v199_v7 = vsel %vm198_vm1, %v196_v6, -inf }
 0x1a7   :  { %200 = vmax.xlane.f32.xlu1 %v199_v7 }
 0x1a9   :  { %v190_v8 = vpop.f32.mrf.mxu3 }
 0x1aa   :  { %v194_v9 = vmul.f32 0.05103104, %v190_v8 }
 0x1ac   :  { %v197_v10 = vadd.f32 %v195_v4, %v194_v9 }
 0x1ae   :  { %v202_v11 = vsel %vm198_vm1, %v197_v10, -inf }
 0x1af   :  { %203 = vmax.xlane.f32.xlu1 %v202_v11 }
 0x1c8   :  { %273 = vrot.lane.b32.xlu1 %v136_v63, %s365_s12 }
 0x21a   :  { %v201_v12 = vpop.xlane.xlu1 %200 }
 0x21b   :  { %v205_v13 = vsub.f32 %v196_v6, %v201_v12 }
 0x21d   :  { %v207_v14 = vmul.f32 1.442695, %v205_v13 }
 0x21f   :  { %330 = vpow2.f32 %v207_v14 }
 0x222   :  { %v204_v15 = vpop.xlane.xlu1 %203 }
 0x223   :  { %v206_v16 = vsub.f32 %v197_v10, %v204_v15 }
 0x225   :  { %v331_v17 = vpop.eup %330  ;;  %v209_v18 = vmul.f32 1.442695, %v206_v16 }
 0x226   :  { %v211_v19 = vsel %vm198_vm1, %v331_v17, 0.0 }
 0x227   :  { %332 = vpow2.f32 %v209_v18  ;;  %212 = vadd.xlane.f32.xlu2 %v211_v19 }
 0x22d   :  { %v333_v20 = vpop.eup %332 }
 0x22e   :  { %v214_v21 = vsel %vm198_vm1, %v333_v20, 0.0 }
 0x22f   :  { %215 = vadd.xlane.f32.xlu2 %v214_v21 }
 0x23a   :  { %v274_v22 = vpop.permute.xlu1 %273 }
 0x23b   :  { %294 = vmatpush.msrb.mxu3 %v274_v22 }
 0x29a   :  { %v213_v23 = vpop.xlane.xlu2 %212 }
 0x29b   :  { %334 = vrcp.f32 %v213_v23  ;;  %v228_v28 = vand.u32 2147483648, %v213_v23  ;;  %v226_v30 = vand.u32 2147483647, %v213_v23  ;;  %vm222_vm3 = vweird.f32 %v213_v23 }
 0x29d   :  { %v229_v33 = vor.u32 1.1754944e-38, %v228_v28  ;;  %vm227_vm5 = vcmp.eq.f32.partialorder %v226_v30, 8.507059e+37 }
 0x2a1   :  { %v335_v24 = vpop.eup %334 }
 0x2a2   :  { %v218_v25 = vmul.f32 %v335_v24, %v213_v23  ;;  %v216_v26 = vpop.xlane.xlu2 %215  ;;  %vm223_vm2 = vweird.f32 %v335_v24 }
 0x2a3   :  { %336 = vrcp.f32 %v216_v26  ;;  %vm224_vm4 = vmor %vm222_vm3, %vm223_vm2  ;;  %v242_v39 = vand.u32 2147483648, %v216_v26  ;;  %v240_v41 = vand.u32 2147483647, %v216_v26  ;;  %vm236_vm7 = vweird.f32 %v216_v26 }
 0x2a4   :  { %v219_v27 = vsub.f32 1.0, %v218_v25 }
 0x2a5   :  { %v243_v43 = vor.u32 1.1754944e-38, %v242_v39  ;;  %vm241_vm9 = vcmp.eq.f32.partialorder %v240_v41, 8.507059e+37 }
 0x2a6   :  { %v220_v29 = vmul.f32 %v335_v24, %v219_v27 }
 0x2a8   :  { %v221_v31 = vadd.f32 %v335_v24, %v220_v29 }
 0x2a9   :  { %v337_v32 = vpop.eup %336 }
 0x2aa   :  { %v225_v34 = vsel %vm224_vm4, %v335_v24, %v221_v31  ;;  %v232_v35 = vmul.f32 %v337_v32, %v216_v26  ;;  %vm237_vm6 = vweird.f32 %v337_v32 }
 0x2ab   :  { %v230_v36 = vsel %vm227_vm5, %v229_v33, %v225_v34  ;;  %vm238_vm8 = vmor %vm236_vm7, %vm237_vm6 }
 0x2ac   :  { %v233_v37 = vsub.f32 1.0, %v232_v35  ;;  %v245_v38 = vmul.f32 %v331_v17, %v230_v36 }
 0x2ae   :  { %v234_v40 = vmul.f32 %v337_v32, %v233_v37  ;;  %323 = vmatmul.msk.f32.vlgmr.msra.gmra.mxu3 %vm198_vm1, %v245_v38 }
 0x2b0   :  { %v235_v42 = vadd.f32 %v337_v32, %v234_v40 }
 0x2b2   :  { %v239_v44 = vsel %vm238_vm8, %v337_v32, %v235_v42 }
 0x2b3   :  { %v244_v45 = vsel %vm241_vm9, %v243_v43, %v239_v44 }
 0x2b4   :  { %v246_v46 = vmul.f32 %v333_v20, %v244_v45 }
 0x2b6   :  { %324 = vmatmul.msk.f32.vlgmr.msrb.gmra.mxu3 %vm198_vm1, %v246_v46 }
 0x331   :  { %v270_v47 = vpop.f32.mrf.mxu3 }
 0x332   :  { %299 = vst.msk [vmem:[#allocation2] sm:$0xff] %vm141_vm0, %v270_v47 }
 0x339   :  { %v296_v48 = vpop.f32.mrf.mxu3 }
 0x33a   :  { %300 = vst.msk [vmem:[#allocation2 + $0x8] sm:$0xff] %vm141_vm0, %v296_v48 }
 0x33b   :  { %313 = dma.vmem_to_hbm [thread:$0]  %s306_s14, 256, %s308_s17, [#allocation3], %s367_s18, %s367_s18, %s368_s19  }
 0x33c   :  { %362 = dma.done.wait [#allocation3], 256  }
 0x33d   :  { %363 = vsyncadd [#allocation3], 4294967040 }
 0x33e   :  { %318 = vsyncpa [#allocation3], 1 }

</bundles_post_ra>
